<compile_context>
chip_gen: v5e
topology: v5e:2x2
jax: 0.10.0
libtpu: 0.0.40
codegen_flags: <defaults>
</compile_context>

<pallas_src>
import jax
import jax.numpy as jnp
from jax.experimental import pallas as pl
from jax.experimental.pallas import tpu as pltpu


def _qfunction_kernel(obs_ref, act_ref, w1o_ref, w1a_ref, b1_ref,
                      w2_ref, b2_ref, w3_ref, b3_ref, out_ref):
    # ---- Layer 1: split matmul (no concat), f32 MXU accumulation -------------
    h = jnp.dot(obs_ref[...], w1o_ref[...], preferred_element_type=jnp.float32)
    h = h + jnp.dot(act_ref[...], w1a_ref[...], preferred_element_type=jnp.float32)
    h = jnp.maximum(h + b1_ref[...], 0.0)                       # f32 bias + ReLU (VPU)

    # ---- Layer 2: bf16 operands, f32 accumulation -----------------------------
    h = jnp.dot(h.astype(jnp.bfloat16), w2_ref[...],
                preferred_element_type=jnp.float32)
    h = jnp.maximum(h + b2_ref[...], 0.0)

    # ---- Layer 3: out_features == 1 -> VPU multiply + lane reduction ----------
    # (avoids a 1/128-lane MXU matmul); bias is an SMEM scalar.
    q = jnp.sum(h * w3_ref[...], axis=-1, keepdims=True) + b3_ref[0, 0]
    out_ref[...] = q.astype(out_ref.dtype)


def qfunction_forward(obs, action, params, *, block_b=256):
    """QFunction MLP forward as one pipelined Pallas call."""
    assert obs.shape[0] == action.shape[0]
    B, obs_dim = obs.shape
    action_dim = action.shape[1]
    hidden = params["w1"].shape[1]

    # Wrapper-side layout plumbing: split + cast weights once.
    w1o = params["w1"][:obs_dim].astype(jnp.bfloat16)        # (obs_dim, hidden)
    w1a = params["w1"][obs_dim:].astype(jnp.bfloat16)        # (action_dim, hidden)
    b1 = params["b1"].astype(jnp.float32)                    # (1, hidden)
    w2 = params["w2"].astype(jnp.bfloat16)                   # (hidden, hidden)
    b2 = params["b2"].astype(jnp.float32)                    # (1, hidden)
    w3 = params["w3"].reshape(1, hidden).astype(jnp.float32) # (1, hidden) for VPU path
    b3 = params["b3"].reshape(1, 1).astype(jnp.float32)      # scalar -> SMEM

    obs_b = obs.astype(jnp.bfloat16)
    act_b = action.astype(jnp.bfloat16)

    # Batch tiling: single full-size block for small B, else 256-row tiles
    # (sublane aligned) with zero-padding of the trailing partial tile.
    if B <= block_b:
        tb, b_pad = B, B
    else:
        tb = block_b
        b_pad = ((B + tb - 1) // tb) * tb
        if b_pad != B:
            pad = b_pad - B
            obs_b = jnp.pad(obs_b, ((0, pad), (0, 0)))
            act_b = jnp.pad(act_b, ((0, pad), (0, 0)))

    grid = (b_pad // tb,)
    resident = lambda a: pl.BlockSpec(a.shape, lambda i: (0,) * a.ndim)

    out = pl.pallas_call(
        _qfunction_kernel,
        out_shape=jax.ShapeDtypeStruct((b_pad, 1), jnp.float32),
        grid=grid,
        in_specs=[
            pl.BlockSpec((tb, obs_dim), lambda i: (i, 0)),      # obs tile
            pl.BlockSpec((tb, action_dim), lambda i: (i, 0)),   # action tile
            resident(w1o), resident(w1a), resident(b1),         # weights stay in VMEM
            resident(w2), resident(b2), resident(w3),
            pl.BlockSpec(memory_space=pltpu.MemorySpace.SMEM),  # b3 scalar
        ],
        out_specs=pl.BlockSpec((tb, 1), lambda i: (i, 0)),
        compiler_params=pltpu.CompilerParams(
            dimension_semantics=("parallel",),                  # megacore on v7x
        ),
    )(obs_b, act_b, w1o, w1a, b1, w2, b2, w3, b3)

    return out[:B]


def init_params(obs_dim, action_dim, hidden_dim, key):
    """Deterministic synthetic parameters (PyTorch-Linear-like uniform init), f32."""
    in_dim = obs_dim + action_dim
    ks = jax.random.split(key, 6)

    def lin(kw, kb, fan_in, fan_out):
        bound = 1.0 / jnp.sqrt(fan_in)
        w = jax.random.uniform(kw, (fan_in, fan_out), jnp.float32, -bound, bound)
        b = jax.random.uniform(kb, (1, fan_out), jnp.float32, -bound, bound)
        return w, b

    w1, b1 = lin(ks[0], ks[1], in_dim, hidden_dim)
    w2, b2 = lin(ks[2], ks[3], hidden_dim, hidden_dim)
    w3, b3 = lin(ks[4], ks[5], hidden_dim, 1)
    return {"w1": w1, "b1": b1, "w2": w2, "b2": b2, "w3": w3, "b3": b3}


def qfunction_reference_f32(obs, action, params):
    """Pure-f32 pure-JAX reference (module semantics)."""
    x = jnp.concatenate([obs, action], axis=1)
    h = jnp.maximum(x @ params["w1"] + params["b1"], 0.0)
    h = jnp.maximum(h @ params["w2"] + params["b2"], 0.0)
    return h @ params["w3"] + params["b3"]


def qfunction_reference_matched(obs, action, params):
    """Pure-JAX reference with the kernel's precision policy (bf16 operands, f32 acc)."""
    x = jnp.concatenate([obs, action], axis=1).astype(jnp.bfloat16)
    h = jnp.dot(x, params["w1"].astype(jnp.bfloat16),
                preferred_element_type=jnp.float32)
    h = jnp.maximum(h + params["b1"], 0.0)
    h = jnp.dot(h.astype(jnp.bfloat16), params["w2"].astype(jnp.bfloat16),
                preferred_element_type=jnp.float32)
    h = jnp.maximum(h + params["b2"], 0.0)
    return h @ params["w3"] + params["b3"]


if __name__ == "__main__":
    B, OBS_DIM, ACTION_DIM, HIDDEN_DIM = 2, 16, 4, 32

    key = jax.random.PRNGKey(0)
    k_obs, k_act, k_params = jax.random.split(key, 3)

    obs = jax.random.normal(k_obs, (B, OBS_DIM), jnp.float32)
    action = jax.random.normal(k_act, (B, ACTION_DIM), jnp.float32)
    params = init_params(OBS_DIM, ACTION_DIM, HIDDEN_DIM, k_params)

    # Small demo batch (single grid step).
    q = jax.block_until_ready(qfunction_forward(obs, action, params))
    assert q.shape == (B, 1)
    q_match = qfunction_reference_matched(obs, action, params)
    q_f32 = qfunction_reference_f32(obs, action, params)
    assert jnp.allclose(q, q_match, atol=1e-3, rtol=1e-3), (q, q_match)
    assert jnp.allclose(q, q_f32, atol=1e-1, rtol=1e-1), (q, q_f32)

    # Larger batch: exercises the tiled/pipelined grid path with padding.
    B2 = 600
    k1, k2 = jax.random.split(jax.random.PRNGKey(1))
    obs2 = jax.random.normal(k1, (B2, OBS_DIM), jnp.float32)
    act2 = jax.random.normal(k2, (B2, ACTION_DIM), jnp.float32)
    q2 = jax.block_until_ready(qfunction_forward(obs2, act2, params, block_b=256))
    assert q2.shape == (B2, 1)
    q2_match = qfunction_reference_matched(obs2, act2, params)
    assert jnp.allclose(q2, q2_match, atol=1e-3, rtol=1e-3)

    print("KERNEL_OK")
</pallas_src>

<mosaic_0001>
module attributes {stable_mosaic.version = 11 : i64} {
  func.func @_qfunction_kernel(%arg0: i32, %arg1: memref<2x16xbf16, #tpu.memory_space<vmem>>, %arg2: memref<2x4xbf16, #tpu.memory_space<vmem>>, %arg3: memref<16x32xbf16, #tpu.memory_space<vmem>>, %arg4: memref<4x32xbf16, #tpu.memory_space<vmem>>, %arg5: memref<1x32xf32, #tpu.memory_space<vmem>>, %arg6: memref<32x32xbf16, #tpu.memory_space<vmem>>, %arg7: memref<1x32xf32, #tpu.memory_space<vmem>>, %arg8: memref<1x32xf32, #tpu.memory_space<vmem>>, %arg9: memref<1x1xf32, #tpu.memory_space<smem>>, %arg10: memref<2x1xf32, #tpu.memory_space<vmem>>) attributes {dimension_semantics = [#tpu.dimension_semantics<parallel>], iteration_bounds = array<i64: 1>, scalar_prefetch = 0 : i64, scratch_operands = 0 : i64, tpu.core_type = #tpu.core_type<tc>, window_params = [{transform_indices = @transform_0, window_bounds = array<i64: 2, 16>}, {transform_indices = @transform_1, window_bounds = array<i64: 2, 4>}, {pipeline_mode = #tpu.pipeline_mode<synchronous>, transform_indices = @transform_2, window_bounds = array<i64: 16, 32>}, {pipeline_mode = #tpu.pipeline_mode<synchronous>, transform_indices = @transform_3, window_bounds = array<i64: 4, 32>}, {pipeline_mode = #tpu.pipeline_mode<synchronous>, transform_indices = @transform_4, window_bounds = array<i64: 1, 32>}, {pipeline_mode = #tpu.pipeline_mode<synchronous>, transform_indices = @transform_5, window_bounds = array<i64: 32, 32>}, {pipeline_mode = #tpu.pipeline_mode<synchronous>, transform_indices = @transform_6, window_bounds = array<i64: 1, 32>}, {pipeline_mode = #tpu.pipeline_mode<synchronous>, transform_indices = @transform_7, window_bounds = array<i64: 1, 32>}, {transform_indices = @transform_8, window_bounds = array<i64: 1, 1>}, {transform_indices = @transform_9, window_bounds = array<i64: 2, 1>}]} {
    %c0 = arith.constant 0 : index
    %c0_0 = arith.constant 0 : index
    %0 = vector.load %arg1[%c0, %c0_0] : memref<2x16xbf16, #tpu.memory_space<vmem>>, vector<2x16xbf16>
    %c0_1 = arith.constant 0 : index
    %c0_2 = arith.constant 0 : index
    %1 = vector.load %arg3[%c0_1, %c0_2] : memref<16x32xbf16, #tpu.memory_space<vmem>>, vector<16x32xbf16>
    %cst = arith.constant dense<0.000000e+00> : vector<2x32xf32>
    %2 = tpu.matmul %0, %1, %cst {dimension_numbers = #tpu.dot_dimension_numbers<[1], [0], [0], [1], [0, 0, 1, 1], [], []>} : vector<2x16xbf16>, vector<16x32xbf16>, vector<2x32xf32> -> vector<2x32xf32>
    %c0_3 = arith.constant 0 : index
    %c0_4 = arith.constant 0 : index
    %3 = vector.load %arg2[%c0_3, %c0_4] : memref<2x4xbf16, #tpu.memory_space<vmem>>, vector<2x4xbf16>
    %c0_5 = arith.constant 0 : index
    %c0_6 = arith.constant 0 : index
    %4 = vector.load %arg4[%c0_5, %c0_6] : memref<4x32xbf16, #tpu.memory_space<vmem>>, vector<4x32xbf16>
    %cst_7 = arith.constant dense<0.000000e+00> : vector<2x32xf32>
    %5 = tpu.matmul %3, %4, %cst_7 {dimension_numbers = #tpu.dot_dimension_numbers<[1], [0], [0], [1], [0, 0, 1, 1], [], []>} : vector<2x4xbf16>, vector<4x32xbf16>, vector<2x32xf32> -> vector<2x32xf32>
    %6 = arith.addf %2, %5 : vector<2x32xf32>
    %c0_8 = arith.constant 0 : index
    %c0_9 = arith.constant 0 : index
    %7 = vector.load %arg5[%c0_8, %c0_9] : memref<1x32xf32, #tpu.memory_space<vmem>>, vector<1x32xf32>
    %8 = vector.broadcast %7 : vector<1x32xf32> to vector<2x32xf32>
    %9 = arith.addf %6, %8 : vector<2x32xf32>
    %cst_10 = arith.constant 0.000000e+00 : f32
    %10 = vector.broadcast %cst_10 : f32 to vector<2x32xf32>
    %11 = arith.maximumf %9, %10 : vector<2x32xf32>
    %12 = arith.truncf %11 : vector<2x32xf32> to vector<2x32xbf16>
    %c0_11 = arith.constant 0 : index
    %c0_12 = arith.constant 0 : index
    %13 = vector.load %arg6[%c0_11, %c0_12] : memref<32x32xbf16, #tpu.memory_space<vmem>>, vector<32x32xbf16>
    %cst_13 = arith.constant dense<0.000000e+00> : vector<2x32xf32>
    %14 = tpu.matmul %12, %13, %cst_13 {dimension_numbers = #tpu.dot_dimension_numbers<[1], [0], [0], [1], [0, 0, 1, 1], [], []>} : vector<2x32xbf16>, vector<32x32xbf16>, vector<2x32xf32> -> vector<2x32xf32>
    %c0_14 = arith.constant 0 : index
    %c0_15 = arith.constant 0 : index
    %15 = vector.load %arg7[%c0_14, %c0_15] : memref<1x32xf32, #tpu.memory_space<vmem>>, vector<1x32xf32>
    %16 = vector.broadcast %15 : vector<1x32xf32> to vector<2x32xf32>
    %17 = arith.addf %14, %16 : vector<2x32xf32>
    %cst_16 = arith.constant 0.000000e+00 : f32
    %18 = vector.broadcast %cst_16 : f32 to vector<2x32xf32>
    %19 = arith.maximumf %17, %18 : vector<2x32xf32>
    %c0_17 = arith.constant 0 : index
    %c0_18 = arith.constant 0 : index
    %20 = vector.load %arg8[%c0_17, %c0_18] : memref<1x32xf32, #tpu.memory_space<vmem>>, vector<1x32xf32>
    %21 = vector.broadcast %20 : vector<1x32xf32> to vector<2x32xf32>
    %22 = arith.mulf %19, %21 : vector<2x32xf32>
    %cst_19 = arith.constant dense<0.000000e+00> : vector<2xf32>
    %23 = vector.multi_reduction <add>, %22, %cst_19 [1] : vector<2x32xf32> to vector<2xf32>
    %24 = vector.shape_cast %23 : vector<2xf32> to vector<2x1xf32>
    %c0_20 = arith.constant 0 : index
    %c0_21 = arith.constant 0 : index
    %25 = memref.load %arg9[%c0_20, %c0_21] : memref<1x1xf32, #tpu.memory_space<smem>>
    %26 = vector.broadcast %25 : f32 to vector<2x1xf32>
    %27 = arith.addf %24, %26 : vector<2x1xf32>
    %c0_22 = arith.constant 0 : index
    %c0_23 = arith.constant 0 : index
    %28 = vector.load %arg10[%c0_22, %c0_23] : memref<2x1xf32, #tpu.memory_space<vmem>>, vector<2x1xf32>
    tpu.vector_store %arg10[%c0_22, %c0_23], %27 {strides = array<i32>} : memref<2x1xf32, #tpu.memory_space<vmem>>, vector<2x1xf32>,
    return
  }
  func.func @transform_0(%arg0: i32) -> (i32, i32) {
    %c0_i32 = arith.constant 0 : i32
    %c0_i32_0 = arith.constant 0 : i32
    return %arg0, %c0_i32 : i32, i32
  }
  func.func @transform_1(%arg0: i32) -> (i32, i32) {
    %c0_i32 = arith.constant 0 : i32
    %c0_i32_0 = arith.constant 0 : i32
    return %arg0, %c0_i32 : i32, i32
  }
  func.func @transform_2(%arg0: i32) -> (i32, i32) {
    %c0_i32 = arith.constant 0 : i32
    %c0_i32_0 = arith.constant 0 : i32
    %c0_i32_1 = arith.constant 0 : i32
    return %c0_i32, %c0_i32_0 : i32, i32
  }
  func.func @transform_3(%arg0: i32) -> (i32, i32) {
    %c0_i32 = arith.constant 0 : i32
    %c0_i32_0 = arith.constant 0 : i32
    %c0_i32_1 = arith.constant 0 : i32
    return %c0_i32, %c0_i32_0 : i32, i32
  }
  func.func @transform_4(%arg0: i32) -> (i32, i32) {
    %c0_i32 = arith.constant 0 : i32
    %c0_i32_0 = arith.constant 0 : i32
    %c0_i32_1 = arith.constant 0 : i32
    return %c0_i32, %c0_i32_0 : i32, i32
  }
  func.func @transform_5(%arg0: i32) -> (i32, i32) {
    %c0_i32 = arith.constant 0 : i32
    %c0_i32_0 = arith.constant 0 : i32
    %c0_i32_1 = arith.constant 0 : i32
    return %c0_i32, %c0_i32_0 : i32, i32
  }
  func.func @transform_6(%arg0: i32) -> (i32, i32) {
    %c0_i32 = arith.constant 0 : i32
    %c0_i32_0 = arith.constant 0 : i32
    %c0_i32_1 = arith.constant 0 : i32
    return %c0_i32, %c0_i32_0 : i32, i32
  }
  func.func @transform_7(%arg0: i32) -> (i32, i32) {
    %c0_i32 = arith.constant 0 : i32
    %c0_i32_0 = arith.constant 0 : i32
    %c0_i32_1 = arith.constant 0 : i32
    return %c0_i32, %c0_i32_0 : i32, i32
  }
  func.func @transform_8(%arg0: i32) -> (i32, i32) {
    %c0_i32 = arith.constant 0 : i32
    %c0_i32_0 = arith.constant 0 : i32
    %c0_i32_1 = arith.constant 0 : i32
    return %c0_i32, %c0_i32_0 : i32, i32
  }
  func.func @transform_9(%arg0: i32) -> (i32, i32) {
    %c0_i32 = arith.constant 0 : i32
    %c0_i32_0 = arith.constant 0 : i32
    return %arg0, %c0_i32 : i32, i32
  }
}

</mosaic_0001>

<bundles_post_ra>
// kernel: tpu_custom_call.1
= control target key start
LH: loop header
LB: loop body
LE: loop exit
PB: predicated region body
PF: predicated region fallthrough
CT: control target
= control target key end

     0   :  { %15 = vsyncpa [#allocation4], 0  ;;  %s380_s0 = inlined_call_operand.vmem [shape: bf16[2,16], index: 0, kind: input, shape index: {}]   ;;  %s381_s1 = inlined_call_operand.hbm [shape: bf16[2,4], index: 1, kind: input, shape index: {}]   ;;  %s382_s2 = inlined_call_operand.hbm [shape: bf16[16,32], index: 2, kind: input, shape index: {}]   ;;  %s383_s3 = inlined_call_operand.vmem [shape: bf16[4,32], index: 3, kind: input, shape index: {}]   ;;  %s384_s4 = inlined_call_operand.vmem [shape: f32[1,32], index: 4, kind: input, shape index: {}]   ;;  %s385_s5 = inlined_call_operand.hbm [shape: bf16[32,32], index: 5, kind: input, shape index: {}]   ;;  %s386_s6 = inlined_call_operand.vmem [shape: f32[1,32], index: 6, kind: input, shape index: {}]   ;;  %s387_s7 = inlined_call_operand.vmem [shape: f32[1,32], index: 7, kind: input, shape index: {}]   ;;  %s388_s8 = inlined_call_operand.<no memory space> [shape: f32[1,1], index: 8, kind: input, shape index: {}]   ;;  %s389_s9 = inlined_call_operand.vmem [shape: f32[2,1], index: 9, kind: output, shape index: {}]  }
   0x1   :  { %16 = vsyncpa [#allocation6], 0  ;;  %s34_s11 = sshll.u32 %s382_s2, 4  ;;  %s295_s12 = smov [#allocation5]   ;;  %s35_s11 = int_to_ptr.hbm [resolvable:$true] %s34_s11 }
   0x2   :  { %s36_s13 = sshll.u32 %s295_s12, 4  ;;  %s24_s16 = sshll.u32 %s381_s1, 4  ;;  %s37_s13 = int_to_ptr.vmem [resolvable:$true] %s36_s13  ;;  %s25_s16 = int_to_ptr.hbm [resolvable:$true] %s24_s16 }
   0x3   :  { %s296_s17 = smov 64   ;;  %s297_s18 = smov 4  }
   0x4   :  { %42 = dma.hbm_to_vmem [thread:$0]  %s35_s11, 128, %s37_s13, [#allocation6], %s296_s17, %s296_s17, %s297_s18  }
   0x5   :  { %s298_s19 = smov [#allocation3]   ;;  %s51_s23 = sshll.u32 %s385_s5, 4  ;;  %s52_s23 = int_to_ptr.hbm [resolvable:$true] %s51_s23 }
   0x6   :  { %s26_s20 = sshll.u32 %s298_s19, 4  ;;  %s299_s2 = smov [#allocation7]   ;;  %s27_s20 = int_to_ptr.vmem [resolvable:$true] %s26_s20 }
   0x7   :  { %29 = dma.hbm_to_vmem [thread:$0]  %s25_s16, 16, %s27_s20, [#allocation4]  }
   0x8   :  { %s53_s24 = sshll.u32 %s299_s2, 4  ;;  %s54_s24 = int_to_ptr.vmem [resolvable:$true] %s53_s24 }
   0x9   :  { %59 = dma.hbm_to_vmem [thread:$0]  %s52_s23, 256, %s54_s24, [#allocation6], %s296_s17, %s296_s17, %s297_s18  }
   0xa   :  { %291 = dma.done.wait [#allocation4], 16  }
   0xb   :  { %292 = vsyncadd [#allocation4], 4294967280 }
   0xc   :  { %293 = dma.done.wait [#allocation6], 384  }
   0xd   :  { %294 = vsyncadd [#allocation6], 4294966912  ;;  %vm88_vm0 = vcmask 1041408   ;;  %v83_v0 = vld [vmem:[%s383_s3] sm:$0x3]  ;;  %v208_v1 = vld [vmem:[#allocation5] sm:$0xff]  ;;  %v183_v24 = vstv %s388_s8 }
   0xe   :  { %vm84_vm1 = vcmask 31744   ;;  %v90_v2 = vsel %vm88_vm0, %v83_v0, 0  ;;  %v82_v3 = vld [vmem:[#allocation3] sm:$0x1]  ;;  %vm111_vm2 = vcmask 130048   ;;  %122 = vmatpush.bf16.msra.mxu1 %v208_v1  ;;  %v210_v5 = vld [vmem:[#allocation7 + $0x8] sm:$0xff] }
   0xf   :  { %99 = vmatpush.bf16.msra.mxu0 %v90_v2  ;;  %v79_v4 = vld [vmem:[%s380_s0] sm:$0x1]  ;;  %165 = vmatpush.bf16.msra.mxu2 %v210_v5  ;;  %v209_v6 = vld [vmem:[#allocation7] sm:$0xff]  ;;  %vm155_vm3 = vcmask 261120   ;;  %vm178_vm4 = vcmask 254976   ;;  %vm185_vm5 = vcmask 1024  }
  0x10   :  { %v216_v7 = vld [vmem:[%s384_s4] ss:$0 sm:$0xff] }
  0x11   :  { %198 = vmatmul.msk.bf16.vlgmr.msra.gmra.mxu1 %vm111_vm2, %v79_v4  ;;  %v217_v16 = vld [vmem:[%s386_s6] ss:$0 sm:$0xff] }
  0x12   :  { %193 = vmatmul.msk.bf16.vlgmr.msra.gmra.mxu0 %vm84_vm1, %v82_v3  ;;  %v218_v19 = vld [vmem:[%s387_s7] ss:$0 sm:$0xff] }
  0x13   :  { %166 = vmatpush.bf16.msra.mxu2 %v209_v6 }
  0x8e   :  { %v124_v9 = vpop.f32.mrf.mxu1 }
  0x8f   :  { %v101_v8 = vpop.f32.mrf.mxu0 }
  0x90   :  { %v125_v10 = vadd.f32 %v124_v9, %v101_v8 }
  0x92   :  { %v132_v11 = vadd.f32 %v216_v7, %v125_v10 }
  0x94   :  { %v133_v12 = vmax.f32 %v132_v11, 0.0 }
  0x96   :  { %v134_v13 = vpack.c.bf16 %v133_v12, %v133_v12  ;;  %v126_v15 = vpop.f32.mrf.mxu1 }
  0x97   :  { %v103_v14 = vpop.f32.mrf.mxu0 }
  0x98   :  { %207 = vmatmul.msk.bf16.vlgmr.msra.gmra.mxu2 %vm155_vm3, %v134_v13 }
 0x11b   :  { %v168_v17 = vpop.f32.mrf.mxu2 }
 0x11c   :  { %v169_v18 = vadd.f32 %v217_v16, %v168_v17 }
 0x11e   :  { %v172_v20 = vmax.f32 %v169_v18, 0.0 }
 0x120   :  { %v177_v21 = vmul.f32 %v218_v19, %v172_v20 }
 0x122   :  { %v179_v22 = vsel %vm178_vm4, %v177_v21, 0.0 }
 0x123   :  { %v170_v23 = vpop.f32.mrf.mxu2  ;;  %180 = vadd.xlane.f32.xlu0 %v179_v22 }
 0x196   :  { %v181_v25 = vpop.xlane.xlu0 %180 }
 0x197   :  { %v184_v26 = vadd.f32 %v183_v24, %v181_v25 }
 0x199   :  { %186 = vst.msk [vmem:[%s389_s9] sm:$0x3] %vm185_vm5, %v184_v26 }
 0x19a   :  { %191 = vsyncpa [#allocation4], 1 }
 0x19b   :  { %192 = vsyncpa [#allocation6], 1 }

</bundles_post_ra>
